<compile_context>
chip_gen: v5e
topology: v5e:2x2
jax: 0.10.0
libtpu: 0.0.40
codegen_flags: <defaults>
</compile_context>

<pallas_src>
import jax
import jax.numpy as jnp
import numpy as np
from jax.experimental import pallas as pl
from jax.experimental.pallas import tpu as pltpu


def _round_up(x, m):
    return (x + m - 1) // m * m


def gru_decoder_kernel(
    emb_ref,       # (Tm*Bp, E)   time-major flattened embeddings
    h0_ref,        # (Bp, H)      initial hidden state (= features, padded)
    w_ih_ref,      # (E, 3H)      packed input weights, gate order r|z|n
    b_ih_ref,      # (1, 3H)
    w_hh_ref,      # (H, 3H)      packed hidden weights
    b_hh_ref,      # (1, 3H)
    w_lh_ref,      # (H, Vp)      hidden half of the output linear (V padded)
    featproj_ref,  # (Tm*Bp, Vp)  features @ W_lf + b_lin, pre-tiled over time
    out_ref,       # (Tm*Bp, Vp)  logits
    gi_scratch,    # VMEM (Tm*Bp, 3H)  batched input projection
    hs_scratch,    # VMEM (Tm*Bp, H)   all GRU hidden states
):
    TmBp, _ = emb_ref.shape
    Bp, H = h0_ref.shape
    Tm = TmBp // Bp

    # (1) Hoisted, batched input projection for ALL timesteps: one MXU matmul
    #     instead of 3 tiny matmuls inside the serial recurrence.
    gi_scratch[...] = (
        jnp.dot(emb_ref[...], w_ih_ref[...], preferred_element_type=jnp.float32)
        + b_ih_ref[...]
    )

    w_hh = w_hh_ref[...]
    b_hh = b_hh_ref[...]

    # (2) Serial GRU recurrence (PyTorch gate order r, z, n). Only one matmul,
    #     one packed sigmoid and one tanh per step remain on the serial chain.
    #     NOTE: like the math (but unlike a packed PyTorch GRU) h keeps
    #     advancing for finished sequences; those rows are never returned, so
    #     the packed outputs still match PyTorch exactly.
    def step(t, h):
        off = pl.multiple_of(t * Bp, Bp)
        gi = gi_scratch[pl.ds(off, Bp), :]                    # (Bp, 3H)
        gh = jnp.dot(h, w_hh, preferred_element_type=jnp.float32) + b_hh
        rz = jax.nn.sigmoid(gi[:, : 2 * H] + gh[:, : 2 * H])  # packed r|z slab
        r = rz[:, :H]
        z = rz[:, H:]
        n = jnp.tanh(gi[:, 2 * H:] + r * gh[:, 2 * H:])
        h_new = (1.0 - z) * n + z * h
        hs_scratch[pl.ds(off, Bp), :] = h_new
        return h_new

    jax.lax.fori_loop(0, Tm, step, h0_ref[...].astype(jnp.float32), unroll=True)

    # (3) Hoisted output linear: one batched (Tm*Bp, H) x (H, Vp) matmul,
    #     lane-dense output slab (Vp is a multiple of 128).
    out_ref[...] = (
        jnp.dot(hs_scratch[...], w_lh_ref[...], preferred_element_type=jnp.float32)
        + featproj_ref[...]
    ).astype(out_ref.dtype)


def rnn_decoder_forward(params, features, questions, lengths):
    """features: (B, H) f32, questions: (B, T) int32, lengths: python list sorted desc."""
    B, _T = questions.shape
    H = features.shape[1]
    E = params["embed"].shape[1]
    V = params["w_lin"].shape[1]

    # NOTE: like pack_padded_sequence, Tm and the packed-gather indices are
    # trace-time functions of `lengths`; a new length pattern recompiles.
    # TODO(synk): accept a padded (Tm, B, V) output + mask downstream to avoid
    # length-dependent recompilation.
    Tm = max(lengths) - 1              # GRU runs over the first (len - 1) tokens

    Bp = _round_up(max(B, 8), 8)       # 8-aligned sublane slices per timestep
    Vp = _round_up(V, 128)             # lane-dense logits store

    # ---- plain-JAX glue: embedding gather, weight packing, padding ----
    emb = params["embed"][questions][:, :Tm, :]                  # (B, Tm, E)
    emb = jnp.pad(emb, ((0, Bp - B), (0, 0), (0, 0)))            # (Bp, Tm, E)
    emb_flat = jnp.transpose(emb, (1, 0, 2)).reshape(Tm * Bp, E)

    h0 = jnp.pad(features, ((0, Bp - B), (0, 0)))                # (Bp, H)

    # PyTorch GRU weights: (3H, E) / (3H, H), gate order r|z|n -> (in, 3H).
    w_ih = jnp.transpose(params["w_ih"])                         # (E, 3H)
    w_hh = jnp.transpose(params["w_hh"])                         # (H, 3H)
    b_ih = params["b_ih"].reshape(1, 3 * H)
    b_hh = params["b_hh"].reshape(1, 3 * H)

    # Output linear split: logits = h @ W_lh + (features @ W_lf + b).
    w_lh = jnp.pad(params["w_lin"][:H], ((0, 0), (0, Vp - V)))   # (H, Vp)
    w_lf = params["w_lin"][H:]                                   # (H, V)
    feat_proj = features @ w_lf + params["b_lin"]                # (B, V) time-invariant
    feat_proj = jnp.pad(feat_proj, ((0, Bp - B), (0, Vp - V)))   # (Bp, Vp)
    feat_proj = jnp.tile(feat_proj, (Tm, 1))                     # (Tm*Bp, Vp)

    logits_full = pl.pallas_call(
        gru_decoder_kernel,
        out_shape=jax.ShapeDtypeStruct((Tm * Bp, Vp), jnp.float32),
        in_specs=[pl.BlockSpec(memory_space=pltpu.MemorySpace.VMEM)] * 8,
        out_specs=pl.BlockSpec(memory_space=pltpu.MemorySpace.VMEM),
        scratch_shapes=[
            pltpu.VMEM((Tm * Bp, 3 * H), jnp.float32),
            pltpu.VMEM((Tm * Bp, H), jnp.float32),
        ],
    )(emb_flat, h0, w_ih, b_ih, w_hh, b_hh, w_lh, feat_proj)

    # Emulate pack_padded_sequence(...).data ordering: time-major, at each step
    # t keep batch rows with (length - 1) > t (lengths sorted descending).
    lengths_np = np.asarray(lengths)
    t_grid, b_grid = np.meshgrid(np.arange(Tm), np.arange(B), indexing="ij")
    valid = (lengths_np[b_grid] - 1) > t_grid
    rows = jnp.asarray((t_grid * Bp + b_grid)[valid], dtype=jnp.int32)
    return logits_full[rows, :V]                                 # (sum(l-1), V)


def reference_forward(params, features, questions, lengths):
    """Pure-JAX reference of the PyTorch forward (for verification)."""
    B, _ = questions.shape
    H = features.shape[1]
    Tm = max(lengths) - 1
    emb = params["embed"][questions]
    wih_t = jnp.transpose(params["w_ih"])
    whh_t = jnp.transpose(params["w_hh"])
    b_ih, b_hh = params["b_ih"], params["b_hh"]

    def step(h, x):
        gi = x @ wih_t + b_ih
        gh = h @ whh_t + b_hh
        r = jax.nn.sigmoid(gi[:, :H] + gh[:, :H])
        z = jax.nn.sigmoid(gi[:, H:2 * H] + gh[:, H:2 * H])
        n = jnp.tanh(gi[:, 2 * H:] + r * gh[:, 2 * H:])
        h_new = (1.0 - z) * n + z * h
        return h_new, h_new

    xs = jnp.transpose(emb[:, :Tm, :], (1, 0, 2))
    _, hs = jax.lax.scan(step, features, xs)               # (Tm, B, H)
    hs = jnp.transpose(hs, (1, 0, 2))                      # (B, Tm, H)
    feat_exp = jnp.broadcast_to(features[:, None, :], (B, Tm, H))
    new_h = jnp.concatenate([hs, feat_exp], axis=2)        # (B, Tm, 2H)
    logits = new_h @ params["w_lin"] + params["b_lin"]     # (B, Tm, V)
    rows = []
    for t in range(Tm):
        for b in range(B):
            if lengths[b] - 1 > t:
                rows.append(logits[b, t])
    return jnp.stack(rows)


if __name__ == "__main__":
    B, T = 4, 8
    E, H, V = 16, 32, 64        # embed_size, hidden_size, vocab_size
    lengths = [8, 7, 5, 3]      # sorted descending (pack_padded_sequence requirement)

    key = jax.random.PRNGKey(0)
    ks = jax.random.split(key, 9)

    embed = jax.random.normal(ks[0], (V, E), jnp.float32) * 0.1
    embed = embed.at[0].set(0.0)   # padding_idx=0
    params = {
        "embed": embed,
        "w_ih": jax.random.normal(ks[1], (3 * H, E), jnp.float32) * 0.1,
        "w_hh": jax.random.normal(ks[2], (3 * H, H), jnp.float32) * 0.1,
        "b_ih": jax.random.normal(ks[3], (3 * H,), jnp.float32) * 0.1,
        "b_hh": jax.random.normal(ks[4], (3 * H,), jnp.float32) * 0.1,
        "w_lin": jax.random.normal(ks[5], (2 * H, V), jnp.float32) * 0.1,
        "b_lin": jax.random.normal(ks[6], (V,), jnp.float32) * 0.1,
    }

    features = jax.random.normal(ks[7], (B, H), jnp.float32)
    questions = jax.random.randint(ks[8], (B, T), 0, V, dtype=jnp.int32)

    out = rnn_decoder_forward(params, features, questions, lengths)
    out = jax.block_until_ready(out)

    ref = reference_forward(params, features, questions, lengths)
    assert out.shape == (sum(l - 1 for l in lengths), V), out.shape
    np.testing.assert_allclose(np.asarray(out), np.asarray(ref), rtol=2e-3, atol=2e-3)

    # TODO(synk): nn.Dropout(0.1) is declared in __init__ but never applied in
    # forward, so it is intentionally omitted here.
    print("KERNEL_OK")
</pallas_src>

<mosaic_0001>
module attributes {stable_mosaic.version = 11 : i64} {
  func.func @gru_decoder_kernel(%arg0: memref<56x16xf32, #tpu.memory_space<vmem>>, %arg1: memref<8x32xf32, #tpu.memory_space<vmem>>, %arg2: memref<16x96xf32, #tpu.memory_space<vmem>>, %arg3: memref<1x96xf32, #tpu.memory_space<vmem>>, %arg4: memref<32x96xf32, #tpu.memory_space<vmem>>, %arg5: memref<1x96xf32, #tpu.memory_space<vmem>>, %arg6: memref<32x128xf32, #tpu.memory_space<vmem>>, %arg7: memref<56x128xf32, #tpu.memory_space<vmem>>, %arg8: memref<56x128xf32, #tpu.memory_space<vmem>>, %arg9: memref<56x96xf32, #tpu.memory_space<vmem>>, %arg10: memref<56x32xf32, #tpu.memory_space<vmem>>) attributes {dimension_semantics = [], scalar_prefetch = 0 : i64, scratch_operands = 2 : i64, tpu.core_type = #tpu.core_type<tc>} {
    %c0 = arith.constant 0 : index
    %c0_0 = arith.constant 0 : index
    %0 = vector.load %arg0[%c0, %c0_0] : memref<56x16xf32, #tpu.memory_space<vmem>>, vector<56x16xf32>
    %c0_1 = arith.constant 0 : index
    %c0_2 = arith.constant 0 : index
    %1 = vector.load %arg2[%c0_1, %c0_2] : memref<16x96xf32, #tpu.memory_space<vmem>>, vector<16x96xf32>
    %cst = arith.constant dense<0.000000e+00> : vector<56x96xf32>
    %2 = tpu.matmul %0, %1, %cst {dimension_numbers = #tpu.dot_dimension_numbers<[1], [0], [0], [1], [0, 0, 1, 1], [], []>} : vector<56x16xf32>, vector<16x96xf32>, vector<56x96xf32> -> vector<56x96xf32>
    %c0_3 = arith.constant 0 : index
    %c0_4 = arith.constant 0 : index
    %3 = vector.load %arg3[%c0_3, %c0_4] : memref<1x96xf32, #tpu.memory_space<vmem>>, vector<1x96xf32>
    %4 = vector.broadcast %3 : vector<1x96xf32> to vector<56x96xf32>
    %5 = arith.addf %2, %4 : vector<56x96xf32>
    %c0_5 = arith.constant 0 : index
    %c0_6 = arith.constant 0 : index
    %6 = vector.load %arg9[%c0_5, %c0_6] : memref<56x96xf32, #tpu.memory_space<vmem>>, vector<56x96xf32>
    tpu.vector_store %arg9[%c0_5, %c0_6], %5 {strides = array<i32>} : memref<56x96xf32, #tpu.memory_space<vmem>>, vector<56x96xf32>,
    %c0_7 = arith.constant 0 : index
    %c0_8 = arith.constant 0 : index
    %7 = vector.load %arg4[%c0_7, %c0_8] : memref<32x96xf32, #tpu.memory_space<vmem>>, vector<32x96xf32>
    %c0_9 = arith.constant 0 : index
    %c0_10 = arith.constant 0 : index
    %8 = vector.load %arg5[%c0_9, %c0_10] : memref<1x96xf32, #tpu.memory_space<vmem>>, vector<1x96xf32>
    %c0_11 = arith.constant 0 : index
    %c0_12 = arith.constant 0 : index
    %9 = vector.load %arg1[%c0_11, %c0_12] : memref<8x32xf32, #tpu.memory_space<vmem>>, vector<8x32xf32>
    %c0_i32 = arith.constant 0 : i32
    %c8_i32 = arith.constant 8 : i32
    %10 = arith.muli %c0_i32, %c8_i32 : i32
    %11 = tpu.assume_multiple %10, 8 : i32
    %12 = arith.index_cast %11 : i32 to index
    %c0_13 = arith.constant 0 : index
    %13 = vector.load %arg9[%12, %c0_13] : memref<56x96xf32, #tpu.memory_space<vmem>>, vector<8x96xf32>
    %cst_14 = arith.constant dense<0.000000e+00> : vector<8x96xf32>
    %14 = tpu.matmul %9, %7, %cst_14 {dimension_numbers = #tpu.dot_dimension_numbers<[1], [0], [0], [1], [0, 0, 1, 1], [], []>} : vector<8x32xf32>, vector<32x96xf32>, vector<8x96xf32> -> vector<8x96xf32>
    %15 = vector.broadcast %8 : vector<1x96xf32> to vector<8x96xf32>
    %16 = arith.addf %14, %15 : vector<8x96xf32>
    %17 = vector.extract_strided_slice %13 {offsets = [0, 0], sizes = [8, 64], strides = [1, 1]} : vector<8x96xf32> to vector<8x64xf32>
    %18 = vector.extract_strided_slice %16 {offsets = [0, 0], sizes = [8, 64], strides = [1, 1]} : vector<8x96xf32> to vector<8x64xf32>
    %19 = arith.addf %17, %18 : vector<8x64xf32>
    %20 = arith.negf %19 : vector<8x64xf32>
    %21 = math.exp %20 : vector<8x64xf32>
    %cst_15 = arith.constant 1.000000e+00 : f32
    %22 = vector.broadcast %cst_15 : f32 to vector<8x64xf32>
    %23 = arith.addf %22, %21 : vector<8x64xf32>
    %24 = arith.divf %22, %23 : vector<8x64xf32>
    %25 = vector.extract_strided_slice %24 {offsets = [0, 0], sizes = [8, 32], strides = [1, 1]} : vector<8x64xf32> to vector<8x32xf32>
    %26 = vector.extract_strided_slice %24 {offsets = [0, 32], sizes = [8, 32], strides = [1, 1]} : vector<8x64xf32> to vector<8x32xf32>
    %27 = vector.extract_strided_slice %13 {offsets = [0, 64], sizes = [8, 32], strides = [1, 1]} : vector<8x96xf32> to vector<8x32xf32>
    %28 = vector.extract_strided_slice %16 {offsets = [0, 64], sizes = [8, 32], strides = [1, 1]} : vector<8x96xf32> to vector<8x32xf32>
    %29 = arith.mulf %25, %28 : vector<8x32xf32>
    %30 = arith.addf %27, %29 : vector<8x32xf32>
    %31 = math.tanh %30 : vector<8x32xf32>
    %cst_16 = arith.constant 1.000000e+00 : f32
    %32 = vector.broadcast %cst_16 : f32 to vector<8x32xf32>
    %33 = arith.subf %32, %26 : vector<8x32xf32>
    %34 = arith.mulf %33, %31 : vector<8x32xf32>
    %35 = arith.mulf %26, %9 : vector<8x32xf32>
    %36 = arith.addf %34, %35 : vector<8x32xf32>
    %37 = arith.index_cast %11 : i32 to index
    %c0_17 = arith.constant 0 : index
    %38 = vector.load %arg10[%37, %c0_17] : memref<56x32xf32, #tpu.memory_space<vmem>>, vector<8x32xf32>
    tpu.vector_store %arg10[%37, %c0_17], %36 {strides = array<i32>} : memref<56x32xf32, #tpu.memory_space<vmem>>, vector<8x32xf32>,
    %c1_i32 = arith.constant 1 : i32
    %c8_i32_18 = arith.constant 8 : i32
    %39 = arith.muli %c1_i32, %c8_i32_18 : i32
    %40 = tpu.assume_multiple %39, 8 : i32
    %41 = arith.index_cast %40 : i32 to index
    %c0_19 = arith.constant 0 : index
    %42 = vector.load %arg9[%41, %c0_19] : memref<56x96xf32, #tpu.memory_space<vmem>>, vector<8x96xf32>
    %cst_20 = arith.constant dense<0.000000e+00> : vector<8x96xf32>
    %43 = tpu.matmul %36, %7, %cst_20 {dimension_numbers = #tpu.dot_dimension_numbers<[1], [0], [0], [1], [0, 0, 1, 1], [], []>} : vector<8x32xf32>, vector<32x96xf32>, vector<8x96xf32> -> vector<8x96xf32>
    %44 = vector.broadcast %8 : vector<1x96xf32> to vector<8x96xf32>
    %45 = arith.addf %43, %44 : vector<8x96xf32>
    %46 = vector.extract_strided_slice %42 {offsets = [0, 0], sizes = [8, 64], strides = [1, 1]} : vector<8x96xf32> to vector<8x64xf32>
    %47 = vector.extract_strided_slice %45 {offsets = [0, 0], sizes = [8, 64], strides = [1, 1]} : vector<8x96xf32> to vector<8x64xf32>
    %48 = arith.addf %46, %47 : vector<8x64xf32>
    %49 = arith.negf %48 : vector<8x64xf32>
    %50 = math.exp %49 : vector<8x64xf32>
    %cst_21 = arith.constant 1.000000e+00 : f32
    %51 = vector.broadcast %cst_21 : f32 to vector<8x64xf32>
    %52 = arith.addf %51, %50 : vector<8x64xf32>
    %53 = arith.divf %51, %52 : vector<8x64xf32>
    %54 = vector.extract_strided_slice %53 {offsets = [0, 0], sizes = [8, 32], strides = [1, 1]} : vector<8x64xf32> to vector<8x32xf32>
    %55 = vector.extract_strided_slice %53 {offsets = [0, 32], sizes = [8, 32], strides = [1, 1]} : vector<8x64xf32> to vector<8x32xf32>
    %56 = vector.extract_strided_slice %42 {offsets = [0, 64], sizes = [8, 32], strides = [1, 1]} : vector<8x96xf32> to vector<8x32xf32>
    %57 = vector.extract_strided_slice %45 {offsets = [0, 64], sizes = [8, 32], strides = [1, 1]} : vector<8x96xf32> to vector<8x32xf32>
    %58 = arith.mulf %54, %57 : vector<8x32xf32>
    %59 = arith.addf %56, %58 : vector<8x32xf32>
    %60 = math.tanh %59 : vector<8x32xf32>
    %cst_22 = arith.constant 1.000000e+00 : f32
    %61 = vector.broadcast %cst_22 : f32 to vector<8x32xf32>
    %62 = arith.subf %61, %55 : vector<8x32xf32>
    %63 = arith.mulf %62, %60 : vector<8x32xf32>
    %64 = arith.mulf %55, %36 : vector<8x32xf32>
    %65 = arith.addf %63, %64 : vector<8x32xf32>
    %66 = arith.index_cast %40 : i32 to index
    %c0_23 = arith.constant 0 : index
    %67 = vector.load %arg10[%66, %c0_23] : memref<56x32xf32, #tpu.memory_space<vmem>>, vector<8x32xf32>
    tpu.vector_store %arg10[%66, %c0_23], %65 {strides = array<i32>} : memref<56x32xf32, #tpu.memory_space<vmem>>, vector<8x32xf32>,
    %c2_i32 = arith.constant 2 : i32
    %c8_i32_24 = arith.constant 8 : i32
    %68 = arith.muli %c2_i32, %c8_i32_24 : i32
    %69 = tpu.assume_multiple %68, 8 : i32
    %70 = arith.index_cast %69 : i32 to index
    %c0_25 = arith.constant 0 : index
    %71 = vector.load %arg9[%70, %c0_25] : memref<56x96xf32, #tpu.memory_space<vmem>>, vector<8x96xf32>
    %cst_26 = arith.constant dense<0.000000e+00> : vector<8x96xf32>
    %72 = tpu.matmul %65, %7, %cst_26 {dimension_numbers = #tpu.dot_dimension_numbers<[1], [0], [0], [1], [0, 0, 1, 1], [], []>} : vector<8x32xf32>, vector<32x96xf32>, vector<8x96xf32> -> vector<8x96xf32>
    %73 = vector.broadcast %8 : vector<1x96xf32> to vector<8x96xf32>
    %74 = arith.addf %72, %73 : vector<8x96xf32>
    %75 = vector.extract_strided_slice %71 {offsets = [0, 0], sizes = [8, 64], strides = [1, 1]} : vector<8x96xf32> to vector<8x64xf32>
    %76 = vector.extract_strided_slice %74 {offsets = [0, 0], sizes = [8, 64], strides = [1, 1]} : vector<8x96xf32> to vector<8x64xf32>
    %77 = arith.addf %75, %76 : vector<8x64xf32>
    %78 = arith.negf %77 : vector<8x64xf32>
    %79 = math.exp %78 : vector<8x64xf32>
    %cst_27 = arith.constant 1.000000e+00 : f32
    %80 = vector.broadcast %cst_27 : f32 to vector<8x64xf32>
    %81 = arith.addf %80, %79 : vector<8x64xf32>
    %82 = arith.divf %80, %81 : vector<8x64xf32>
    %83 = vector.extract_strided_slice %82 {offsets = [0, 0], sizes = [8, 32], strides = [1, 1]} : vector<8x64xf32> to vector<8x32xf32>
    %84 = vector.extract_strided_slice %82 {offsets = [0, 32], sizes = [8, 32], strides = [1, 1]} : vector<8x64xf32> to vector<8x32xf32>
    %85 = vector.extract_strided_slice %71 {offsets = [0, 64], sizes = [8, 32], strides = [1, 1]} : vector<8x96xf32> to vector<8x32xf32>
    %86 = vector.extract_strided_slice %74 {offsets = [0, 64], sizes = [8, 32], strides = [1, 1]} : vector<8x96xf32> to vector<8x32xf32>
    %87 = arith.mulf %83, %86 : vector<8x32xf32>
    %88 = arith.addf %85, %87 : vector<8x32xf32>
    %89 = math.tanh %88 : vector<8x32xf32>
    %cst_28 = arith.constant 1.000000e+00 : f32
    %90 = vector.broadcast %cst_28 : f32 to vector<8x32xf32>
    %91 = arith.subf %90, %84 : vector<8x32xf32>
    %92 = arith.mulf %91, %89 : vector<8x32xf32>
    %93 = arith.mulf %84, %65 : vector<8x32xf32>
    %94 = arith.addf %92, %93 : vector<8x32xf32>
    %95 = arith.index_cast %69 : i32 to index
    %c0_29 = arith.constant 0 : index
    %96 = vector.load %arg10[%95, %c0_29] : memref<56x32xf32, #tpu.memory_space<vmem>>, vector<8x32xf32>
    tpu.vector_store %arg10[%95, %c0_29], %94 {strides = array<i32>} : memref<56x32xf32, #tpu.memory_space<vmem>>, vector<8x32xf32>,
    %c3_i32 = arith.constant 3 : i32
    %c8_i32_30 = arith.constant 8 : i32
    %97 = arith.muli %c3_i32, %c8_i32_30 : i32
    %98 = tpu.assume_multiple %97, 8 : i32
    %99 = arith.index_cast %98 : i32 to index
    %c0_31 = arith.constant 0 : index
    %100 = vector.load %arg9[%99, %c0_31] : memref<56x96xf32, #tpu.memory_space<vmem>>, vector<8x96xf32>
    %cst_32 = arith.constant dense<0.000000e+00> : vector<8x96xf32>
    %101 = tpu.matmul %94, %7, %cst_32 {dimension_numbers = #tpu.dot_dimension_numbers<[1], [0], [0], [1], [0, 0, 1, 1], [], []>} : vector<8x32xf32>, vector<32x96xf32>, vector<8x96xf32> -> vector<8x96xf32>
    %102 = vector.broadcast %8 : vector<1x96xf32> to vector<8x96xf32>
    %103 = arith.addf %101, %102 : vector<8x96xf32>
    %104 = vector.extract_strided_slice %100 {offsets = [0, 0], sizes = [8, 64], strides = [1, 1]} : vector<8x96xf32> to vector<8x64xf32>
    %105 = vector.extract_strided_slice %103 {offsets = [0, 0], sizes = [8, 64], strides = [1, 1]} : vector<8x96xf32> to vector<8x64xf32>
    %106 = arith.addf %104, %105 : vector<8x64xf32>
    %107 = arith.negf %106 : vector<8x64xf32>
    %108 = math.exp %107 : vector<8x64xf32>
    %cst_33 = arith.constant 1.000000e+00 : f32
    %109 = vector.broadcast %cst_33 : f32 to vector<8x64xf32>
    %110 = arith.addf %109, %108 : vector<8x64xf32>
    %111 = arith.divf %109, %110 : vector<8x64xf32>
    %112 = vector.extract_strided_slice %111 {offsets = [0, 0], sizes = [8, 32], strides = [1, 1]} : vector<8x64xf32> to vector<8x32xf32>
    %113 = vector.extract_strided_slice %111 {offsets = [0, 32], sizes = [8, 32], strides = [1, 1]} : vector<8x64xf32> to vector<8x32xf32>
    %114 = vector.extract_strided_slice %100 {offsets = [0, 64], sizes = [8, 32], strides = [1, 1]} : vector<8x96xf32> to vector<8x32xf32>
    %115 = vector.extract_strided_slice %103 {offsets = [0, 64], sizes = [8, 32], strides = [1, 1]} : vector<8x96xf32> to vector<8x32xf32>
    %116 = arith.mulf %112, %115 : vector<8x32xf32>
    %117 = arith.addf %114, %116 : vector<8x32xf32>
    %118 = math.tanh %117 : vector<8x32xf32>
    %cst_34 = arith.constant 1.000000e+00 : f32
    %119 = vector.broadcast %cst_34 : f32 to vector<8x32xf32>
    %120 = arith.subf %119, %113 : vector<8x32xf32>
    %121 = arith.mulf %120, %118 : vector<8x32xf32>
    %122 = arith.mulf %113, %94 : vector<8x32xf32>
    %123 = arith.addf %121, %122 : vector<8x32xf32>
    %124 = arith.index_cast %98 : i32 to index
    %c0_35 = arith.constant 0 : index
    %125 = vector.load %arg10[%124, %c0_35] : memref<56x32xf32, #tpu.memory_space<vmem>>, vector<8x32xf32>
    tpu.vector_store %arg10[%124, %c0_35], %123 {strides = array<i32>} : memref<56x32xf32, #tpu.memory_space<vmem>>, vector<8x32xf32>,
    %c4_i32 = arith.constant 4 : i32
    %c8_i32_36 = arith.constant 8 : i32
    %126 = arith.muli %c4_i32, %c8_i32_36 : i32
    %127 = tpu.assume_multiple %126, 8 : i32
    %128 = arith.index_cast %127 : i32 to index
    %c0_37 = arith.constant 0 : index
    %129 = vector.load %arg9[%128, %c0_37] : memref<56x96xf32, #tpu.memory_space<vmem>>, vector<8x96xf32>
    %cst_38 = arith.constant dense<0.000000e+00> : vector<8x96xf32>
    %130 = tpu.matmul %123, %7, %cst_38 {dimension_numbers = #tpu.dot_dimension_numbers<[1], [0], [0], [1], [0, 0, 1, 1], [], []>} : vector<8x32xf32>, vector<32x96xf32>, vector<8x96xf32> -> vector<8x96xf32>
    %131 = vector.broadcast %8 : vector<1x96xf32> to vector<8x96xf32>
    %132 = arith.addf %130, %131 : vector<8x96xf32>
    %133 = vector.extract_strided_slice %129 {offsets = [0, 0], sizes = [8, 64], strides = [1, 1]} : vector<8x96xf32> to vector<8x64xf32>
    %134 = vector.extract_strided_slice %132 {offsets = [0, 0], sizes = [8, 64], strides = [1, 1]} : vector<8x96xf32> to vector<8x64xf32>
    %135 = arith.addf %133, %134 : vector<8x64xf32>
    %136 = arith.negf %135 : vector<8x64xf32>
    %137 = math.exp %136 : vector<8x64xf32>
    %cst_39 = arith.constant 1.000000e+00 : f32
    %138 = vector.broadcast %cst_39 : f32 to vector<8x64xf32>
    %139 = arith.addf %138, %137 : vector<8x64xf32>
    %140 = arith.divf %138, %139 : vector<8x64xf32>
    %141 = vector.extract_strided_slice %140 {offsets = [0, 0], sizes = [8, 32], strides = [1, 1]} : vector<8x64xf32> to vector<8x32xf32>
    %142 = vector.extract_strided_slice %140 {offsets = [0, 32], sizes = [8, 32], strides = [1, 1]} : vector<8x64xf32> to vector<8x32xf32>
    %143 = vector.extract_strided_slice %129 {offsets = [0, 64], sizes = [8, 32], strides = [1, 1]} : vector<8x96xf32> to vector<8x32xf32>
    %144 = vector.extract_strided_slice %132 {offsets = [0, 64], sizes = [8, 32], strides = [1, 1]} : vector<8x96xf32> to vector<8x32xf32>
    %145 = arith.mulf %141, %144 : vector<8x32xf32>
    %146 = arith.addf %143, %145 : vector<8x32xf32>
    %147 = math.tanh %146 : vector<8x32xf32>
    %cst_40 = arith.constant 1.000000e+00 : f32
    %148 = vector.broadcast %cst_40 : f32 to vector<8x32xf32>
    %149 = arith.subf %148, %142 : vector<8x32xf32>
    %150 = arith.mulf %149, %147 : vector<8x32xf32>
    %151 = arith.mulf %142, %123 : vector<8x32xf32>
    %152 = arith.addf %150, %151 : vector<8x32xf32>
    %153 = arith.index_cast %127 : i32 to index
    %c0_41 = arith.constant 0 : index
    %154 = vector.load %arg10[%153, %c0_41] : memref<56x32xf32, #tpu.memory_space<vmem>>, vector<8x32xf32>
    tpu.vector_store %arg10[%153, %c0_41], %152 {strides = array<i32>} : memref<56x32xf32, #tpu.memory_space<vmem>>, vector<8x32xf32>,
    %c5_i32 = arith.constant 5 : i32
    %c8_i32_42 = arith.constant 8 : i32
    %155 = arith.muli %c5_i32, %c8_i32_42 : i32
    %156 = tpu.assume_multiple %155, 8 : i32
    %157 = arith.index_cast %156 : i32 to index
    %c0_43 = arith.constant 0 : index
    %158 = vector.load %arg9[%157, %c0_43] : memref<56x96xf32, #tpu.memory_space<vmem>>, vector<8x96xf32>
    %cst_44 = arith.constant dense<0.000000e+00> : vector<8x96xf32>
    %159 = tpu.matmul %152, %7, %cst_44 {dimension_numbers = #tpu.dot_dimension_numbers<[1], [0], [0], [1], [0, 0, 1, 1], [], []>} : vector<8x32xf32>, vector<32x96xf32>, vector<8x96xf32> -> vector<8x96xf32>
    %160 = vector.broadcast %8 : vector<1x96xf32> to vector<8x96xf32>
    %161 = arith.addf %159, %160 : vector<8x96xf32>
    %162 = vector.extract_strided_slice %158 {offsets = [0, 0], sizes = [8, 64], strides = [1, 1]} : vector<8x96xf32> to vector<8x64xf32>
    %163 = vector.extract_strided_slice %161 {offsets = [0, 0], sizes = [8, 64], strides = [1, 1]} : vector<8x96xf32> to vector<8x64xf32>
    %164 = arith.addf %162, %163 : vector<8x64xf32>
    %165 = arith.negf %164 : vector<8x64xf32>
    %166 = math.exp %165 : vector<8x64xf32>
    %cst_45 = arith.constant 1.000000e+00 : f32
    %167 = vector.broadcast %cst_45 : f32 to vector<8x64xf32>
    %168 = arith.addf %167, %166 : vector<8x64xf32>
    %169 = arith.divf %167, %168 : vector<8x64xf32>
    %170 = vector.extract_strided_slice %169 {offsets = [0, 0], sizes = [8, 32], strides = [1, 1]} : vector<8x64xf32> to vector<8x32xf32>
    %171 = vector.extract_strided_slice %169 {offsets = [0, 32], sizes = [8, 32], strides = [1, 1]} : vector<8x64xf32> to vector<8x32xf32>
    %172 = vector.extract_strided_slice %158 {offsets = [0, 64], sizes = [8, 32], strides = [1, 1]} : vector<8x96xf32> to vector<8x32xf32>
    %173 = vector.extract_strided_slice %161 {offsets = [0, 64], sizes = [8, 32], strides = [1, 1]} : vector<8x96xf32> to vector<8x32xf32>
    %174 = arith.mulf %170, %173 : vector<8x32xf32>
    %175 = arith.addf %172, %174 : vector<8x32xf32>
    %176 = math.tanh %175 : vector<8x32xf32>
    %cst_46 = arith.constant 1.000000e+00 : f32
    %177 = vector.broadcast %cst_46 : f32 to vector<8x32xf32>
    %178 = arith.subf %177, %171 : vector<8x32xf32>
    %179 = arith.mulf %178, %176 : vector<8x32xf32>
    %180 = arith.mulf %171, %152 : vector<8x32xf32>
    %181 = arith.addf %179, %180 : vector<8x32xf32>
    %182 = arith.index_cast %156 : i32 to index
    %c0_47 = arith.constant 0 : index
    %183 = vector.load %arg10[%182, %c0_47] : memref<56x32xf32, #tpu.memory_space<vmem>>, vector<8x32xf32>
    tpu.vector_store %arg10[%182, %c0_47], %181 {strides = array<i32>} : memref<56x32xf32, #tpu.memory_space<vmem>>, vector<8x32xf32>,
    %c6_i32 = arith.constant 6 : i32
    %c8_i32_48 = arith.constant 8 : i32
    %184 = arith.muli %c6_i32, %c8_i32_48 : i32
    %185 = tpu.assume_multiple %184, 8 : i32
    %186 = arith.index_cast %185 : i32 to index
    %c0_49 = arith.constant 0 : index
    %187 = vector.load %arg9[%186, %c0_49] : memref<56x96xf32, #tpu.memory_space<vmem>>, vector<8x96xf32>
    %cst_50 = arith.constant dense<0.000000e+00> : vector<8x96xf32>
    %188 = tpu.matmul %181, %7, %cst_50 {dimension_numbers = #tpu.dot_dimension_numbers<[1], [0], [0], [1], [0, 0, 1, 1], [], []>} : vector<8x32xf32>, vector<32x96xf32>, vector<8x96xf32> -> vector<8x96xf32>
    %189 = vector.broadcast %8 : vector<1x96xf32> to vector<8x96xf32>
    %190 = arith.addf %188, %189 : vector<8x96xf32>
    %191 = vector.extract_strided_slice %187 {offsets = [0, 0], sizes = [8, 64], strides = [1, 1]} : vector<8x96xf32> to vector<8x64xf32>
    %192 = vector.extract_strided_slice %190 {offsets = [0, 0], sizes = [8, 64], strides = [1, 1]} : vector<8x96xf32> to vector<8x64xf32>
    %193 = arith.addf %191, %192 : vector<8x64xf32>
    %194 = arith.negf %193 : vector<8x64xf32>
    %195 = math.exp %194 : vector<8x64xf32>
    %cst_51 = arith.constant 1.000000e+00 : f32
    %196 = vector.broadcast %cst_51 : f32 to vector<8x64xf32>
    %197 = arith.addf %196, %195 : vector<8x64xf32>
    %198 = arith.divf %196, %197 : vector<8x64xf32>
    %199 = vector.extract_strided_slice %198 {offsets = [0, 0], sizes = [8, 32], strides = [1, 1]} : vector<8x64xf32> to vector<8x32xf32>
    %200 = vector.extract_strided_slice %198 {offsets = [0, 32], sizes = [8, 32], strides = [1, 1]} : vector<8x64xf32> to vector<8x32xf32>
    %201 = vector.extract_strided_slice %187 {offsets = [0, 64], sizes = [8, 32], strides = [1, 1]} : vector<8x96xf32> to vector<8x32xf32>
    %202 = vector.extract_strided_slice %190 {offsets = [0, 64], sizes = [8, 32], strides = [1, 1]} : vector<8x96xf32> to vector<8x32xf32>
    %203 = arith.mulf %199, %202 : vector<8x32xf32>
    %204 = arith.addf %201, %203 : vector<8x32xf32>
    %205 = math.tanh %204 : vector<8x32xf32>
    %cst_52 = arith.constant 1.000000e+00 : f32
    %206 = vector.broadcast %cst_52 : f32 to vector<8x32xf32>
    %207 = arith.subf %206, %200 : vector<8x32xf32>
    %208 = arith.mulf %207, %205 : vector<8x32xf32>
    %209 = arith.mulf %200, %181 : vector<8x32xf32>
    %210 = arith.addf %208, %209 : vector<8x32xf32>
    %211 = arith.index_cast %185 : i32 to index
    %c0_53 = arith.constant 0 : index
    %212 = vector.load %arg10[%211, %c0_53] : memref<56x32xf32, #tpu.memory_space<vmem>>, vector<8x32xf32>
    tpu.vector_store %arg10[%211, %c0_53], %210 {strides = array<i32>} : memref<56x32xf32, #tpu.memory_space<vmem>>, vector<8x32xf32>,
    %c7_i32 = arith.constant 7 : i32
    %c0_54 = arith.constant 0 : index
    %c0_55 = arith.constant 0 : index
    %213 = vector.load %arg10[%c0_54, %c0_55] : memref<56x32xf32, #tpu.memory_space<vmem>>, vector<56x32xf32>
    %c0_56 = arith.constant 0 : index
    %c0_57 = arith.constant 0 : index
    %214 = vector.load %arg6[%c0_56, %c0_57] : memref<32x128xf32, #tpu.memory_space<vmem>>, vector<32x128xf32>
    %cst_58 = arith.constant dense<0.000000e+00> : vector<56x128xf32>
    %215 = tpu.matmul %213, %214, %cst_58 {dimension_numbers = #tpu.dot_dimension_numbers<[1], [0], [0], [1], [0, 0, 1, 1], [], []>} : vector<56x32xf32>, vector<32x128xf32>, vector<56x128xf32> -> vector<56x128xf32>
    %c0_59 = arith.constant 0 : index
    %c0_60 = arith.constant 0 : index
    %216 = vector.load %arg7[%c0_59, %c0_60] : memref<56x128xf32, #tpu.memory_space<vmem>>, vector<56x128xf32>
    %217 = arith.addf %215, %216 : vector<56x128xf32>
    %c0_61 = arith.constant 0 : index
    %c0_62 = arith.constant 0 : index
    %218 = vector.load %arg8[%c0_61, %c0_62] : memref<56x128xf32, #tpu.memory_space<vmem>>, vector<56x128xf32>
    tpu.vector_store %arg8[%c0_61, %c0_62], %217 {strides = array<i32>} : memref<56x128xf32, #tpu.memory_space<vmem>>, vector<56x128xf32>,
    return
  }
}

</mosaic_0001>

<bundles_post_ra>
// kernel: tpu_custom_call.1
= control target key start
LH: loop header
LB: loop body
LE: loop exit
PB: predicated region body
PF: predicated region fallthrough
CT: control target
= control target key end

     0   :  { %13 = vsyncpa [#allocation5], 0  ;;  %s1194_s0 = inlined_call_operand.vmem [shape: f32[56,16], index: 0, kind: input, shape index: {}]   ;;  %s1195_s1 = inlined_call_operand.hbm [shape: f32[8,32], index: 1, kind: input, shape index: {}]   ;;  %s1196_s2 = inlined_call_operand.vmem [shape: f32[16,96], index: 2, kind: input, shape index: {}]   ;;  %s1197_s3 = inlined_call_operand.vmem [shape: f32[1,96], index: 3, kind: input, shape index: {}]   ;;  %s1198_s4 = inlined_call_operand.hbm [shape: f32[32,96], index: 4, kind: input, shape index: {}]   ;;  %s1199_s5 = inlined_call_operand.vmem [shape: f32[1,96], index: 5, kind: input, shape index: {}]   ;;  %s1200_s6 = inlined_call_operand.hbm [shape: f32[32,128], index: 6, kind: input, shape index: {}]   ;;  %s1201_s7 = inlined_call_operand.vmem [shape: f32[56,128], index: 7, kind: input, shape index: {}]   ;;  %s1202_s8 = inlined_call_operand.hbm [shape: f32[56,128], index: 8, kind: output, shape index: {}]  }
   0x1   :  { %14 = vsyncpa [#allocation8], 0  ;;  %s37_s29 = sshll.u32 %s1198_s4, 4  ;;  %s38_s29 = int_to_ptr.hbm [resolvable:$true] %s37_s29 }
   0x2   :  { %15 = vsyncpa [#allocation6], 0  ;;  %s944_s30 = smov [#allocation7]   ;;  %s23_s12 = sshll.u32 %s1195_s1, 4  ;;  %s24_s12 = int_to_ptr.hbm [resolvable:$true] %s23_s12 }
   0x3   :  { %s39_s9 = sshll.u32 %s944_s30, 4  ;;  %s945_s13 = smov 128   ;;  %s40_s9 = int_to_ptr.vmem [resolvable:$true] %s39_s9 }
   0x4   :  { %s946_s14 = smov 8   ;;  %s947_s15 = smov [#allocation4]  }
   0x5   :  { %45 = dma.hbm_to_vmem [thread:$0]  %s38_s29, 512, %s40_s9, [#allocation8], %s945_s13, %s945_s13, %s946_s14  }
   0x6   :  { %s25_s16 = sshll.u32 %s947_s15, 4  ;;  %s52_s18 = sshll.u32 %s1200_s6, 4  ;;  %s26_s16 = int_to_ptr.vmem [resolvable:$true] %s25_s16  ;;  %s53_s18 = int_to_ptr.hbm [resolvable:$true] %s52_s18 }
   0x7   :  { %28 = dma.hbm_to_vmem [thread:$0]  %s24_s12, 128, %s26_s16, [#allocation5]  }
   0x8   :  { %s948_s19 = smov [#allocation9]  }
   0x9   :  { %s54_s20 = sshll.u32 %s948_s19, 4  ;;  %s55_s20 = int_to_ptr.vmem [resolvable:$true] %s54_s20 }
   0xa   :  { %60 = dma.hbm_to_vmem [thread:$0]  %s53_s18, 512, %s55_s20, [#allocation8], %s945_s13, %s945_s13, %s946_s14  }
   0xb   :  { %938 = dma.done.wait [#allocation5], 128  }
   0xc   :  { %939 = vsyncadd [#allocation5], 4294967168 }
   0xd   :  { %940 = dma.done.wait [#allocation8], 1024  }
   0xe   :  { %941 = vsyncadd [#allocation8], 4294966272  ;;  %v83_v0 = vld [vmem:[%s1196_s2 + $0x8] sm:$0xff]  ;;  %v82_v1 = vld [vmem:[%s1196_s2] sm:$0xff]  ;;  %vm88_vm0 = vcmask 130048   ;;  %vm166_vm1 = vcmask 261120  }
   0xf   :  { %124 = vmatpush.msra.mxu0 %v83_v0  ;;  %783 = vmatpush.msra.mxu1 %v83_v0  ;;  %v75_v2 = vld [vmem:[%s1194_s0] sm:$0xff]  ;;  %v81_v3 = vld [vmem:[%s1194_s0 + $0x30] sm:$0xff]  ;;  %v1031_v5 = vld [vmem:[#allocation7 + $0x10] sm:$0xff]  ;;  %vm148_vm2 = vcmask 785408   ;;  %s951_s30 = smov 32   ;;  %s741_s11 = sshll.u32 %s1202_s8, 4  ;;  %s742_s11 = int_to_ptr.hbm [resolvable:$true] %s741_s11 }
  0x10   :  { %v1025_v4 = vld [vmem:[#allocation7 + $0x18] sm:$0xff]  ;;  %v1035_v6 = vld [vmem:[#allocation7 + $0x8] sm:$0xff]  ;;  %v1040_v7 = vld [vmem:[#allocation7] sm:$0xff] }
  0x11   :  { %322 = vmatpush.msra.mxu3 %v1025_v4  ;;  %460 = vmatpush.msra.mxu2 %v1025_v4  ;;  %v161_v8 = vld [vmem:[#allocation4] sm:$0xff]  ;;  %v1063_v9 = vld [vmem:[%s1197_s3] ss:$0 sm:$0xff]  ;;  %s949_s3 = smov 64   ;;  %v76_v37 = vld [vmem:[%s1194_s0 + $0x8] sm:$0xff] }
  0x12   :  { %125 = vmatpush.msra.mxu0 %v82_v1  ;;  %784 = vmatpush.msra.mxu1 %v82_v1  ;;  %v1072_v14 = vld [vmem:[%s1199_s5] ss:$0 sm:$0xff]  ;;  %s950_s5 = smov 96  }
  0x13   :  { %755 = vmatmul.msk.f32.vlgmr.msra.gmra.mxu0 %vm88_vm0, %v75_v2  ;;  %761 = vmatmul.msk.f32.vlgmr.msra.gmra.mxu1 %vm88_vm0, %v81_v3 }
  0x14   :  { %182 = vmatpush.msrb.mxu1 %v1025_v4  ;;  %323 = vmatpush.msra.mxu3 %v1031_v5 }
  0x15   :  { %461 = vmatpush.msra.mxu2 %v1031_v5 }
  0x16   :  { %183 = vmatpush.msrb.mxu1 %v1031_v5  ;;  %324 = vmatpush.msra.mxu3 %v1035_v6 }
  0x17   :  { %462 = vmatpush.msra.mxu2 %v1035_v6 }
  0x18   :  { %184 = vmatpush.msrb.mxu1 %v1035_v6  ;;  %325 = vmatpush.msra.mxu3 %v1040_v7 }
  0x19   :  { %463 = vmatpush.msra.mxu2 %v1040_v7 }
  0x1a   :  { %529 = vmatpush.msrb.mxu3 %v1025_v4  ;;  %185 = vmatpush.msrb.mxu1 %v1040_v7 }
  0x1b   :  { %762 = vmatmul.msk.f32.vlgmr.msrb.gmra.mxu1 %vm166_vm1, %v161_v8  ;;  %756 = vmatmul.msk.f32.gmra.mxu0 %vm88_vm0, %v76_v37 }
  0x1c   :  { %530 = vmatpush.msrb.mxu3 %v1031_v5  ;;  %253 = vmatpush.msra.mxu1 %v1025_v4 }
  0x1e   :  { %531 = vmatpush.msrb.mxu3 %v1035_v6  ;;  %254 = vmatpush.msra.mxu1 %v1031_v5 }
  0x20   :  { %532 = vmatpush.msrb.mxu3 %v1040_v7  ;;  %255 = vmatpush.msra.mxu1 %v1035_v6 }
  0x22   :  { %256 = vmatpush.msra.mxu1 %v1040_v7 }
  0x24   :  { %391 = vmatpush.msrb.mxu1 %v1025_v4 }
  0x26   :  { %392 = vmatpush.msrb.mxu1 %v1031_v5 }
  0x28   :  { %393 = vmatpush.msrb.mxu1 %v1035_v6 }
  0x2a   :  { %394 = vmatpush.msrb.mxu1 %v1040_v7 }
  0x90   :  { %v127_v10 = vpop.f32.mrf.mxu0  ;;  %v145_v11 = vpop.f32.mrf.mxu1 }
  0x91   :  { %v128_v12 = vadd.f32 %v1063_v9, %v127_v10  ;;  %v146_v13 = vadd.f32 %v1063_v9, %v145_v11 }
  0x93   :  { %149 = vst.msk [vmem:[#allocation2] sm:$0xff] %vm148_vm2, %v128_v12 }
  0x94   :  { %155 = vst.msk [vmem:[#allocation2 + $0x30] sm:$0xff] %vm148_vm2, %v146_v13 }
  0x98   :  { %v187_v15 = vpop.f32.mrf.mxu1  ;;  %v130_v45 = vpop.f32.mrf.mxu0 }
  0x99   :  { %v188_v16 = vadd.f32 %v1072_v14, %v187_v15  ;;  %v131_v46 = vadd.f32 %v1063_v9, %v130_v45 }
  0x9a   :  { %v162_v17 = vld [vmem:[#allocation2] sm:$0xff] }
  0x9b   :  { %211 = vrot.lane.b32.xlu0 %v188_v16, %s949_s3  ;;  %v190_v18 = vadd.f32 %v188_v16, %v162_v17  ;;  %150 = vst.msk [vmem:[#allocation2 + $0x8] sm:$0xff] %vm148_vm2, %v131_v46 }
  0x9d   :  { %v763_v19 = vmul.f32 -1.442695, %v190_v18 }
  0x9f   :  { %800 = vpow2.f32 %v763_v19 }
  0xa2   :  { %v238_v49 = vld [vmem:[#allocation2 + $0x8] sm:$0xff] }
  0xa5   :  { %v801_v20 = vpop.eup %800 }
  0xa6   :  { %v194_v21 = vadd.f32 1.0, %v801_v20 }
  0xa8   :  { %802 = vrcp.f32 %v194_v21  ;;  %v206_v27 = vand.u32 2147483648, %v194_v21  ;;  %vm200_vm4 = vweird.f32 %v194_v21  ;;  %v204_v28 = vand.u32 2147483647, %v194_v21 }
  0xaa   :  { %v207_v30 = vor.u32 1.1754944e-38, %v206_v27  ;;  %vm205_vm6 = vcmp.eq.f32.partialorder %v204_v28, 8.507059e+37 }
  0xae   :  { %v803_v22 = vpop.eup %802 }
  0xaf   :  { %v196_v23 = vmul.f32 %v803_v22, %v194_v21  ;;  %vm201_vm3 = vweird.f32 %v803_v22 }
  0xb0   :  { %vm202_vm5 = vmor %vm200_vm4, %vm201_vm3 }
  0xb1   :  { %v197_v24 = vsub.f32 1.0, %v196_v23 }
  0xb3   :  { %v198_v25 = vmul.f32 %v803_v22, %v197_v24 }
  0xb5   :  { %v199_v26 = vadd.f32 %v803_v22, %v198_v25 }
  0xb7   :  { %v203_v29 = vsel %vm202_vm5, %v803_v22, %v199_v26 }
  0xb8   :  { %v208_v32 = vsel %vm205_vm6, %v207_v30, %v203_v29 }
  0xb9   :  { %v221_v39 = vsub.f32 1.0, %v208_v32 }
 0x10d   :  { %v212_v31 = vpop.permute.xlu0 %211 }
 0x10e   :  { %v214_v33 = vmul.f32 %v212_v31, %v208_v32 }
 0x110   :  { %216 = vrot.lane.b32.xlu0 %v214_v33, %s949_s3 }
 0x182   :  { %v217_v34 = vpop.permute.xlu0 %216 }
 0x183   :  { %v219_v35 = vadd.f32 %v217_v34, %v162_v17 }
 0x185   :  { %804 = vtanh.f32 %v219_v35 }
 0x18b   :  { %v805_v36 = vpop.eup %804 }
 0x18c   :  { %223 = vrot.lane.b32.xlu1 %v805_v36, %s950_s5 }
 0x194   :  { %227 = vrot.lane.b32.xlu1 %v161_v8, %s951_s30 }
 0x1fe   :  { %v224_v38 = vpop.permute.xlu1 %223 }
 0x1ff   :  { %v226_v41 = vmul.f32 %v224_v38, %v221_v39  ;;  %v78_v38 = vld [vmem:[%s1194_s0 + $0x18] sm:$0xff] }
 0x206   :  { %v228_v40 = vpop.permute.xlu1 %227 }
 0x207   :  { %v230_v42 = vmul.f32 %v228_v40, %v208_v32 }
 0x209   :  { %v231_v43 = vadd.f32 %v230_v42, %v226_v41 }
 0x20b   :  { %233 = vrot.lane.b32.xlu2 %v231_v43, %s950_s5 }
 0x265   :  { %v234_v44 = vpop.permute.xlu2 %233 }
 0x266   :  { %236 = vst.msk [vmem:[#allocation3] sm:$0xff] %vm166_vm1, %v234_v44  ;;  %764 = vmatmul.msk.f32.vlgmr.msra.gmra.mxu1 %vm166_vm1, %v234_v44 }
 0x267   :  { %598 = vmatpush.msra.mxu1 %v1025_v4 }
 0x269   :  { %599 = vmatpush.msra.mxu1 %v1031_v5  ;;  %v77_v5 = vld [vmem:[%s1194_s0 + $0x10] sm:$0xff] }
 0x26a   :  { %757 = vmatmul.msk.f32.gmra.mxu0 %vm88_vm0, %v77_v5  ;;  %v79_v5 = vld [vmem:[%s1194_s0 + $0x20] sm:$0xff] }
 0x26b   :  { %600 = vmatpush.msra.mxu1 %v1035_v6 }
 0x26d   :  { %601 = vmatpush.msra.mxu1 %v1040_v7 }
 0x272   :  { %758 = vmatmul.msk.f32.gmra.mxu0 %vm88_vm0, %v78_v38 }
 0x27a   :  { %759 = vmatmul.msk.f32.gmra.mxu0 %vm88_vm0, %v79_v5 }
 0x2e3   :  { %v258_v47 = vpop.f32.mrf.mxu1 }
 0x2e4   :  { %v259_v48 = vadd.f32 %v1072_v14, %v258_v47 }
 0x2e6   :  { %282 = vrot.lane.b32.xlu2 %v259_v48, %s949_s3  ;;  %v261_v50 = vadd.f32 %v259_v48, %v238_v49 }
 0x2e7   :  { %v133_v13 = vpop.f32.mrf.mxu0 }
 0x2e8   :  { %v765_v51 = vmul.f32 -1.442695, %v261_v50  ;;  %v134_v15 = vadd.f32 %v1063_v9, %v133_v13  ;;  %v660_v13 = vld [vmem:[#allocation9 + $0x10] sm:$0xff] }
 0x2ea   :  { %806 = vpow2.f32 %v765_v51  ;;  %151 = vst.msk [vmem:[#allocation2 + $0x10] sm:$0xff] %vm148_vm2, %v134_v15  ;;  %v659_v15 = vld [vmem:[#allocation9 + $0x8] sm:$0xff] }
 0x2ef   :  { %v136_v44 = vpop.f32.mrf.mxu0 }
 0x2f0   :  { %v807_v52 = vpop.eup %806  ;;  %v137_v45 = vadd.f32 %v1063_v9, %v136_v44 }
 0x2f1   :  { %v265_v53 = vadd.f32 1.0, %v807_v52  ;;  %v307_v18 = vld [vmem:[#allocation2 + $0x10] sm:$0xff] }
 0x2f2   :  { %152 = vst.msk [vmem:[#allocation2 + $0x18] sm:$0xff] %vm148_vm2, %v137_v45 }
 0x2f3   :  { %808 = vrcp.f32 %v265_v53  ;;  %v277_v59 = vand.u32 2147483648, %v265_v53  ;;  %vm271_vm8 = vweird.f32 %v265_v53  ;;  %v275_v60 = vand.u32 2147483647, %v265_v53 }
 0x2f5   :  { %v278_v62 = vor.u32 1.1754944e-38, %v277_v59  ;;  %vm276_vm10 = vcmp.eq.f32.partialorder %v275_v60, 8.507059e+37 }
 0x2f9   :  { %v809_v54 = vpop.eup %808 }
 0x2fa   :  { %v267_v55 = vmul.f32 %v809_v54, %v265_v53  ;;  %vm272_vm7 = vweird.f32 %v809_v54 }
 0x2fb   :  { %vm273_vm9 = vmor %vm271_vm8, %vm272_vm7 }
 0x2fc   :  { %v268_v56 = vsub.f32 1.0, %v267_v55 }
 0x2fe   :  { %v269_v57 = vmul.f32 %v809_v54, %v268_v56 }
 0x300   :  { %v270_v58 = vadd.f32 %v809_v54, %v269_v57 }
 0x302   :  { %v274_v61 = vsel %vm273_vm9, %v809_v54, %v270_v58 }
 0x303   :  { %v279_v0 = vsel %vm276_vm10, %v278_v62, %v274_v61 }
 0x304   :  { %v292_v6 = vsub.f32 1.0, %v279_v0  ;;  %v298_v8 = vmul.f32 %v279_v0, %v231_v43 }
 0x340   :  { %v283_v63 = vpop.permute.xlu2 %282 }
 0x341   :  { %v285_v1 = vmul.f32 %v283_v63, %v279_v0 }
 0x343   :  { %287 = vrot.lane.b32.xlu0 %v285_v1, %s949_s3 }
 0x3b5   :  { %v288_v2 = vpop.permute.xlu0 %287 }
 0x3b6   :  { %v290_v3 = vadd.f32 %v288_v2, %v238_v49  ;;  %v376_v49 = vld [vmem:[#allocation2 + $0x18] sm:$0xff] }
 0x3b8   :  { %810 = vtanh.f32 %v290_v3 }
 0x3be   :  { %v811_v4 = vpop.eup %810 }
 0x3bf   :  { %294 = vrot.lane.b32.xlu1 %v811_v4, %s950_s5 }
 0x431   :  { %v295_v7 = vpop.permute.xlu1 %294 }
 0x432   :  { %v297_v10 = vmul.f32 %v295_v7, %v292_v6 }
 0x434   :  { %v299_v11 = vadd.f32 %v298_v8, %v297_v10 }
 0x436   :  { %301 = vrot.lane.b32.xlu2 %v299_v11, %s950_s5 }
 0x490   :  { %v302_v12 = vpop.permute.xlu2 %301 }
 0x491   :  { %305 = vst.msk [vmem:[#allocation3 + $0x8] sm:$0xff] %vm166_vm1, %v302_v12  ;;  %766 = vmatmul.msk.f32.vlgmr.msra.gmra.mxu3 %vm166_vm1, %v302_v12  ;;  %v661_v12 = vld [vmem:[#allocation9 + $0x18] sm:$0xff] }
 0x492   :  { %702 = vmatpush.msrb.mxu2 %v661_v12  ;;  %785 = vmatpush.msra.mxu3 %v661_v12 }
 0x494   :  { %703 = vmatpush.msrb.mxu2 %v660_v13  ;;  %786 = vmatpush.msra.mxu3 %v660_v13 }
 0x496   :  { %704 = vmatpush.msrb.mxu2 %v659_v15  ;;  %787 = vmatpush.msra.mxu3 %v659_v15 }
 0x514   :  { %v327_v16 = vpop.f32.mrf.mxu3 }
 0x515   :  { %v328_v17 = vadd.f32 %v1072_v14, %v327_v16  ;;  %v658_v16 = vld [vmem:[#allocation9] sm:$0xff] }
 0x516   :  { %705 = vmatpush.msrb.mxu2 %v658_v16  ;;  %788 = vmatpush.msra.mxu3 %v658_v16 }
 0x517   :  { %351 = vrot.lane.b32.xlu0 %v328_v17, %s949_s3  ;;  %v330_v19 = vadd.f32 %v328_v17, %v307_v18 }
 0x519   :  { %v767_v20 = vmul.f32 -1.442695, %v330_v19 }
 0x51b   :  { %812 = vpow2.f32 %v767_v20  ;;  %v651_v20 = vld [vmem:[#allocation3] sm:$0xff] }
 0x521   :  { %v813_v21 = vpop.eup %812 }
 0x522   :  { %v334_v22 = vadd.f32 1.0, %v813_v21  ;;  %v652_v21 = vld [vmem:[#allocation3 + $0x8] sm:$0xff] }
 0x524   :  { %814 = vrcp.f32 %v334_v22  ;;  %v346_v28 = vand.u32 2147483648, %v334_v22  ;;  %vm340_vm12 = vweird.f32 %v334_v22  ;;  %v344_v29 = vand.u32 2147483647, %v334_v22 }
 0x526   :  { %v347_v31 = vor.u32 1.1754944e-38, %v346_v28  ;;  %vm345_vm14 = vcmp.eq.f32.partialorder %v344_v29, 8.507059e+37  ;;  %v663_v29 = vld [vmem:[%s1201_s7 + $0x8] sm:$0xff] }
 0x52a   :  { %v815_v23 = vpop.eup %814 }
 0x52b   :  { %v336_v24 = vmul.f32 %v815_v23, %v334_v22  ;;  %vm341_vm11 = vweird.f32 %v815_v23 }
 0x52c   :  { %vm342_vm13 = vmor %vm340_vm12, %vm341_vm11 }
 0x52d   :  { %v337_v25 = vsub.f32 1.0, %v336_v24 }
 0x52f   :  { %v338_v26 = vmul.f32 %v815_v23, %v337_v25 }
 0x531   :  { %v339_v27 = vadd.f32 %v815_v23, %v338_v26  ;;  %v662_v26 = vld [vmem:[%s1201_s7] sm:$0xff] }
 0x533   :  { %v343_v30 = vsel %vm342_vm13, %v815_v23, %v339_v27 }
 0x534   :  { %v348_v33 = vsel %vm345_vm14, %v347_v31, %v343_v30 }
 0x535   :  { %v361_v39 = vsub.f32 1.0, %v348_v33  ;;  %v367_v41 = vmul.f32 %v348_v33, %v299_v11 }
 0x589   :  { %v352_v32 = vpop.permute.xlu0 %351 }
 0x58a   :  { %v354_v34 = vmul.f32 %v352_v32, %v348_v33  ;;  %v664_v32 = vld [vmem:[%s1201_s7 + $0x10] sm:$0xff] }
 0x58c   :  { %356 = vrot.lane.b32.xlu1 %v354_v34, %s949_s3 }
 0x5fe   :  { %v357_v35 = vpop.permute.xlu1 %356 }
 0x5ff   :  { %v359_v36 = vadd.f32 %v357_v35, %v307_v18  ;;  %v139_v18 = vpop.f32.mrf.mxu0  ;;  %v665_v35 = vld [vmem:[%s1201_s7 + $0x18] sm:$0xff] }
 0x600   :  { %v140_v19 = vadd.f32 %v1063_v9, %v139_v18 }
 0x601   :  { %816 = vtanh.f32 %v359_v36 }
 0x602   :  { %153 = vst.msk [vmem:[#allocation2 + $0x20] sm:$0xff] %vm148_vm2, %v140_v19 }
 0x607   :  { %v817_v37 = vpop.eup %816 }
 0x608   :  { %363 = vrot.lane.b32.xlu2 %v817_v37, %s950_s5 }
 0x609   :  { %v445_v38 = vld [vmem:[#allocation2 + $0x20] sm:$0xff] }
 0x662   :  { %v364_v40 = vpop.permute.xlu2 %363 }
 0x663   :  { %v366_v42 = vmul.f32 %v364_v40, %v361_v39 }
 0x665   :  { %v368_v43 = vadd.f32 %v367_v41, %v366_v42 }
 0x667   :  { %370 = vrot.lane.b32.xlu0 %v368_v43, %s950_s5 }
 0x6d9   :  { %v371_v46 = vpop.permute.xlu0 %370 }
 0x6da   :  { %374 = vst.msk [vmem:[#allocation3 + $0x10] sm:$0xff] %vm166_vm1, %v371_v46  ;;  %768 = vmatmul.msk.f32.vlgmr.msrb.gmra.mxu1 %vm166_vm1, %v371_v46 }
 0x6e1   :  { %v653_v22 = vld [vmem:[#allocation3 + $0x10] sm:$0xff] }
 0x757   :  { %v396_v47 = vpop.f32.mrf.mxu1 }
 0x758   :  { %v397_v48 = vadd.f32 %v1072_v14, %v396_v47 }
 0x75a   :  { %420 = vrot.lane.b32.xlu1 %v397_v48, %s949_s3  ;;  %v399_v50 = vadd.f32 %v397_v48, %v376_v49 }
 0x75c   :  { %v769_v51 = vmul.f32 -1.442695, %v399_v50 }
 0x75e   :  { %818 = vpow2.f32 %v769_v51 }
 0x764   :  { %v819_v52 = vpop.eup %818 }
 0x765   :  { %v403_v53 = vadd.f32 1.0, %v819_v52 }
 0x767   :  { %820 = vrcp.f32 %v403_v53  ;;  %v415_v59 = vand.u32 2147483648, %v403_v53  ;;  %vm409_vm3 = vweird.f32 %v403_v53  ;;  %v413_v60 = vand.u32 2147483647, %v403_v53 }
 0x769   :  { %v416_v62 = vor.u32 1.1754944e-38, %v415_v59  ;;  %vm414_vm5 = vcmp.eq.f32.partialorder %v413_v60, 8.507059e+37 }
 0x76d   :  { %v821_v54 = vpop.eup %820 }
 0x76e   :  { %v405_v55 = vmul.f32 %v821_v54, %v403_v53  ;;  %vm410_vm15 = vweird.f32 %v821_v54 }
 0x76f   :  { %vm411_vm4 = vmor %vm409_vm3, %vm410_vm15 }
 0x770   :  { %v406_v56 = vsub.f32 1.0, %v405_v55 }
 0x772   :  { %v407_v57 = vmul.f32 %v821_v54, %v406_v56 }
 0x774   :  { %v408_v58 = vadd.f32 %v821_v54, %v407_v57 }
 0x776   :  { %v412_v61 = vsel %vm411_vm4, %v821_v54, %v408_v58  ;;  %v80_v58 = vld [vmem:[%s1194_s0 + $0x28] sm:$0xff] }
 0x777   :  { %v417_v0 = vsel %vm414_vm5, %v416_v62, %v412_v61  ;;  %760 = vmatmul.msk.f32.gmra.mxu0 %vm88_vm0, %v80_v58 }
 0x778   :  { %v430_v6 = vsub.f32 1.0, %v417_v0  ;;  %v436_v8 = vmul.f32 %v417_v0, %v368_v43 }
 0x7cc   :  { %v421_v63 = vpop.permute.xlu1 %420 }
 0x7cd   :  { %v423_v1 = vmul.f32 %v421_v63, %v417_v0 }
 0x7cf   :  { %425 = vrot.lane.b32.xlu2 %v423_v1, %s949_s3 }
 0x7f4   :  { %v142_v1 = vpop.f32.mrf.mxu0 }
 0x829   :  { %v426_v2 = vpop.permute.xlu2 %425 }
 0x82a   :  { %v428_v3 = vadd.f32 %v426_v2, %v376_v49  ;;  %v143_v2 = vadd.f32 %v1063_v9, %v142_v1 }
 0x82c   :  { %822 = vtanh.f32 %v428_v3  ;;  %154 = vst.msk [vmem:[#allocation2 + $0x28] sm:$0xff] %vm148_vm2, %v143_v2 }
 0x832   :  { %v823_v4 = vpop.eup %822 }
 0x833   :  { %432 = vrot.lane.b32.xlu0 %v823_v4, %s950_s5 }
 0x8a5   :  { %v433_v7 = vpop.permute.xlu0 %432 }
 0x8a6   :  { %v435_v10 = vmul.f32 %v433_v7, %v430_v6  ;;  %v666_v6 = vld [vmem:[%s1201_s7 + $0x20] sm:$0xff] }
 0x8a8   :  { %v1125_v11 = vadd.f32 %v436_v8, %v435_v10  ;;  %v514_v10 = vld [vmem:[#allocation2 + $0x28] sm:$0xff] }
 0x8aa   :  { %439 = vrot.lane.b32.xlu1 %v1125_v11, %s950_s5 }
 0x91c   :  { %v440_v17 = vpop.permute.xlu1 %439 }
 0x91d   :  { %443 = vst.msk [vmem:[#allocation3 + $0x18] sm:$0xff] %vm166_vm1, %v440_v17  ;;  %770 = vmatmul.msk.f32.vlgmr.msra.gmra.mxu2 %vm166_vm1, %v440_v17 }
 0x924   :  { %v654_v23 = vld [vmem:[#allocation3 + $0x18] sm:$0xff] }
 0x925   :  { %776 = vmatmul.msk.f32.vlgmr.msrb.gmra.mxu2 %vm166_vm1, %v651_v20 }
 0x92d   :  { %777 = vmatmul.msk.f32.gmra.mxu2 %vm166_vm1, %v652_v21 }
 0x935   :  { %778 = vmatmul.msk.f32.gmra.mxu2 %vm166_vm1, %v653_v22 }
 0x93d   :  { %779 = vmatmul.msk.f32.gmra.mxu2 %vm166_vm1, %v654_v23 }
 0x9a0   :  { %v465_v24 = vpop.f32.mrf.mxu2 }
 0x9a1   :  { %v466_v25 = vadd.f32 %v1072_v14, %v465_v24 }
 0x9a3   :  { %489 = vrot.lane.b32.xlu2 %v466_v25, %s949_s3  ;;  %v468_v39 = vadd.f32 %v466_v25, %v445_v38 }
 0x9a5   :  { %v771_v40 = vmul.f32 -1.442695, %v468_v39  ;;  %v667_v39 = vld [vmem:[%s1201_s7 + $0x28] sm:$0xff] }
 0x9a7   :  { %824 = vpow2.f32 %v771_v40 }
 0x9a8   :  { %v707_v27 = vpop.f32.mrf.mxu2 }
 0x9a9   :  { %v708_v28 = vadd.f32 %v707_v27, %v662_v26 }
 0x9ab   :  { %728 = vst [vmem:[#allocation10] sm:$0xff] %v708_v28 }
 0x9ad   :  { %v825_v41 = vpop.eup %824 }
 0x9ae   :  { %v472_v42 = vadd.f32 1.0, %v825_v41 }
 0x9b0   :  { %v710_v30 = vpop.f32.mrf.mxu2  ;;  %826 = vrcp.f32 %v472_v42  ;;  %v484_v48 = vand.u32 2147483648, %v472_v42  ;;  %vm478_vm7 = vweird.f32 %v472_v42  ;;  %v482_v49 = vand.u32 2147483647, %v472_v42 }
 0x9b1   :  { %v711_v31 = vadd.f32 %v710_v30, %v663_v29 }
 0x9b2   :  { %v485_v51 = vor.u32 1.1754944e-38, %v484_v48  ;;  %vm483_vm9 = vcmp.eq.f32.partialorder %v482_v49, 8.507059e+37 }
 0x9b3   :  { %729 = vst [vmem:[#allocation10 + $0x8] sm:$0xff] %v711_v31 }
 0x9b6   :  { %v827_v43 = vpop.eup %826 }
 0x9b7   :  { %v474_v44 = vmul.f32 %v827_v43, %v472_v42  ;;  %vm479_vm6 = vweird.f32 %v827_v43  ;;  %v583_v42 = vld [vmem:[#allocation2 + $0x30] sm:$0xff] }
 0x9b8   :  { %v713_v33 = vpop.f32.mrf.mxu2  ;;  %vm480_vm8 = vmor %vm478_vm7, %vm479_vm6 }
 0x9b9   :  { %v714_v34 = vadd.f32 %v713_v33, %v664_v32  ;;  %v475_v45 = vsub.f32 1.0, %v474_v44 }
 0x9bb   :  { %730 = vst [vmem:[#allocation10 + $0x10] sm:$0xff] %v714_v34  ;;  %v476_v46 = vmul.f32 %v827_v43, %v475_v45 }
 0x9bd   :  { %v477_v47 = vadd.f32 %v827_v43, %v476_v46 }
 0x9bf   :  { %v481_v50 = vsel %vm480_vm8, %v827_v43, %v477_v47 }
 0x9c0   :  { %v716_v36 = vpop.f32.mrf.mxu2  ;;  %v486_v53 = vsel %vm483_vm9, %v485_v51, %v481_v50 }
 0x9c1   :  { %v717_v37 = vadd.f32 %v716_v36, %v665_v35  ;;  %v499_v59 = vsub.f32 1.0, %v486_v53  ;;  %v505_v61 = vmul.f32 %v486_v53, %v1125_v11 }
 0x9c3   :  { %731 = vst [vmem:[#allocation10 + $0x18] sm:$0xff] %v717_v37 }
 0x9fd   :  { %v490_v52 = vpop.permute.xlu2 %489 }
 0x9fe   :  { %v492_v54 = vmul.f32 %v490_v52, %v486_v53 }
 0xa00   :  { %494 = vrot.lane.b32.xlu0 %v492_v54, %s949_s3 }
 0xa72   :  { %v495_v55 = vpop.permute.xlu0 %494 }
 0xa73   :  { %v497_v56 = vadd.f32 %v495_v55, %v445_v38 }
 0xa75   :  { %828 = vtanh.f32 %v497_v56 }
 0xa7b   :  { %v829_v57 = vpop.eup %828 }
 0xa7c   :  { %501 = vrot.lane.b32.xlu1 %v829_v57, %s950_s5 }
 0xaee   :  { %v502_v60 = vpop.permute.xlu1 %501 }
 0xaef   :  { %v504_v62 = vmul.f32 %v502_v60, %v499_v59 }
 0xaf1   :  { %v506_v63 = vadd.f32 %v505_v61, %v504_v62 }
 0xaf3   :  { %508 = vrot.lane.b32.xlu2 %v506_v63, %s950_s5 }
 0xb4d   :  { %v509_v0 = vpop.permute.xlu2 %508 }
 0xb4e   :  { %512 = vst.msk [vmem:[#allocation3 + $0x20] sm:$0xff] %vm166_vm1, %v509_v0  ;;  %772 = vmatmul.msk.f32.vlgmr.msrb.gmra.mxu3 %vm166_vm1, %v509_v0 }
 0xb55   :  { %v655_v3 = vld [vmem:[#allocation3 + $0x20] sm:$0xff] }
 0xb56   :  { %780 = vmatmul.msk.f32.vlgmr.msra.gmra.mxu3 %vm166_vm1, %v655_v3 }
 0xbd1   :  { %v534_v4 = vpop.f32.mrf.mxu3 }
 0xbd2   :  { %v535_v5 = vadd.f32 %v1072_v14, %v534_v4  ;;  %v668_v4 = vld [vmem:[%s1201_s7 + $0x30] sm:$0xff] }
 0xbd4   :  { %558 = vrot.lane.b32.xlu0 %v535_v5, %s949_s3  ;;  %v537_v11 = vadd.f32 %v535_v5, %v514_v10 }
 0xbd6   :  { %v773_v9 = vmul.f32 -1.442695, %v537_v11 }
 0xbd8   :  { %830 = vpow2.f32 %v773_v9 }
 0xbd9   :  { %v719_v7 = vpop.f32.mrf.mxu3 }
 0xbda   :  { %v720_v8 = vadd.f32 %v719_v7, %v666_v6 }
 0xbdc   :  { %732 = vst [vmem:[#allocation10 + $0x20] sm:$0xff] %v720_v8 }
 0xbde   :  { %v831_v12 = vpop.eup %830 }
 0xbdf   :  { %v541_v13 = vadd.f32 1.0, %v831_v12 }
 0xbe1   :  { %832 = vrcp.f32 %v541_v13  ;;  %v553_v20 = vand.u32 2147483648, %v541_v13  ;;  %vm547_vm2 = vweird.f32 %v541_v13  ;;  %v551_v21 = vand.u32 2147483647, %v541_v13 }
 0xbe3   :  { %v554_v23 = vor.u32 1.1754944e-38, %v553_v20  ;;  %vm552_vm11 = vcmp.eq.f32.partialorder %v551_v21, 8.507059e+37 }
 0xbe7   :  { %v833_v15 = vpop.eup %832 }
 0xbe8   :  { %v543_v16 = vmul.f32 %v833_v15, %v541_v13  ;;  %vm548_vm0 = vweird.f32 %v833_v15 }
 0xbe9   :  { %vm549_vm10 = vmor %vm547_vm2, %vm548_vm0 }
 0xbea   :  { %v544_v17 = vsub.f32 1.0, %v543_v16 }
 0xbec   :  { %v545_v18 = vmul.f32 %v833_v15, %v544_v17 }
 0xbee   :  { %v546_v19 = vadd.f32 %v833_v15, %v545_v18 }
 0xbf0   :  { %v550_v22 = vsel %vm549_vm10, %v833_v15, %v546_v19 }
 0xbf1   :  { %v555_v25 = vsel %vm552_vm11, %v554_v23, %v550_v22 }
 0xbf2   :  { %v568_v30 = vsub.f32 1.0, %v555_v25  ;;  %v574_v32 = vmul.f32 %v555_v25, %v506_v63 }
 0xc46   :  { %v559_v24 = vpop.permute.xlu0 %558 }
 0xc47   :  { %v561_v26 = vmul.f32 %v559_v24, %v555_v25 }
 0xc49   :  { %563 = vrot.lane.b32.xlu1 %v561_v26, %s949_s3 }
 0xcbb   :  { %v564_v27 = vpop.permute.xlu1 %563 }
 0xcbc   :  { %v566_v28 = vadd.f32 %v564_v27, %v514_v10 }
 0xcbe   :  { %834 = vtanh.f32 %v566_v28 }
 0xcc4   :  { %v835_v29 = vpop.eup %834 }
 0xcc5   :  { %570 = vrot.lane.b32.xlu2 %v835_v29, %s950_s5 }
 0xd1f   :  { %v571_v31 = vpop.permute.xlu2 %570 }
 0xd20   :  { %v573_v33 = vmul.f32 %v571_v31, %v568_v30 }
 0xd22   :  { %v575_v34 = vadd.f32 %v574_v32, %v573_v33 }
 0xd24   :  { %577 = vrot.lane.b32.xlu0 %v575_v34, %s950_s5 }
 0xd96   :  { %v578_v35 = vpop.permute.xlu0 %577 }
 0xd97   :  { %581 = vst.msk [vmem:[#allocation3 + $0x28] sm:$0xff] %vm166_vm1, %v578_v35  ;;  %774 = vmatmul.msk.f32.vlgmr.msra.gmra.mxu1 %vm166_vm1, %v578_v35 }
 0xd9e   :  { %v656_v36 = vld [vmem:[#allocation3 + $0x28] sm:$0xff] }
 0xd9f   :  { %781 = vmatmul.msk.f32.gmra.mxu3 %vm166_vm1, %v656_v36 }
 0xe14   :  { %v603_v37 = vpop.f32.mrf.mxu1 }
 0xe15   :  { %v604_v38 = vadd.f32 %v1072_v14, %v603_v37 }
 0xe17   :  { %627 = vrot.lane.b32.xlu1 %v604_v38, %s949_s3  ;;  %v606_v43 = vadd.f32 %v604_v38, %v583_v42 }
 0xe19   :  { %v775_v44 = vmul.f32 -1.442695, %v606_v43 }
 0xe1b   :  { %836 = vpow2.f32 %v775_v44 }
 0xe21   :  { %v837_v45 = vpop.eup %836 }
 0xe22   :  { %v722_v40 = vpop.f32.mrf.mxu3  ;;  %v610_v46 = vadd.f32 1.0, %v837_v45 }
 0xe23   :  { %v723_v41 = vadd.f32 %v722_v40, %v667_v39 }
 0xe24   :  { %838 = vrcp.f32 %v610_v46  ;;  %v622_v51 = vand.u32 2147483648, %v610_v46  ;;  %vm616_vm13 = vweird.f32 %v610_v46  ;;  %v620_v52 = vand.u32 2147483647, %v610_v46 }
 0xe25   :  { %733 = vst [vmem:[#allocation10 + $0x28] sm:$0xff] %v723_v41 }
 0xe26   :  { %v623_v54 = vor.u32 1.1754944e-38, %v622_v51  ;;  %vm621_vm15 = vcmp.eq.f32.partialorder %v620_v52, 8.507059e+37 }
 0xe2a   :  { %v839_v47 = vpop.eup %838 }
 0xe2b   :  { %v612_v48 = vmul.f32 %v839_v47, %v610_v46  ;;  %vm617_vm12 = vweird.f32 %v839_v47 }
 0xe2c   :  { %vm618_vm14 = vmor %vm616_vm13, %vm617_vm12 }
 0xe2d   :  { %v613_v49 = vsub.f32 1.0, %v612_v48 }
 0xe2f   :  { %v614_v14 = vmul.f32 %v839_v47, %v613_v49 }
 0xe31   :  { %v615_v50 = vadd.f32 %v839_v47, %v614_v14 }
 0xe33   :  { %v619_v53 = vsel %vm618_vm14, %v839_v47, %v615_v50 }
 0xe34   :  { %v624_v56 = vsel %vm621_vm15, %v623_v54, %v619_v53 }
 0xe35   :  { %v637_v61 = vsub.f32 1.0, %v624_v56  ;;  %v643_v63 = vmul.f32 %v624_v56, %v575_v34 }
 0xe89   :  { %v628_v55 = vpop.permute.xlu1 %627 }
 0xe8a   :  { %v630_v57 = vmul.f32 %v628_v55, %v624_v56 }
 0xe8c   :  { %632 = vrot.lane.b32.xlu2 %v630_v57, %s949_s3  ;;  %s952_s3 = smov [#allocation10]  }
 0xe8d   :  { %s739_s30 = sshll.u32 %s952_s3, 4  ;;  %s740_s30 = int_to_ptr.vmem [resolvable:$true] %s739_s30 }
 0xee6   :  { %v633_v58 = vpop.permute.xlu2 %632 }
 0xee7   :  { %v635_v59 = vadd.f32 %v633_v58, %v583_v42 }
 0xee9   :  { %840 = vtanh.f32 %v635_v59 }
 0xeef   :  { %v841_v60 = vpop.eup %840 }
 0xef0   :  { %639 = vrot.lane.b32.xlu0 %v841_v60, %s950_s5 }
 0xf62   :  { %v640_v62 = vpop.permute.xlu0 %639 }
 0xf63   :  { %v642_v0 = vmul.f32 %v640_v62, %v637_v61 }
 0xf65   :  { %v644_v1 = vadd.f32 %v643_v63, %v642_v0 }
 0xf67   :  { %646 = vrot.lane.b32.xlu1 %v644_v1, %s950_s5 }
 0xfd9   :  { %v647_v2 = vpop.permute.xlu1 %646 }
 0xfda   :  { %650 = vst.msk [vmem:[#allocation3 + $0x30] sm:$0xff] %vm166_vm1, %v647_v2 }
 0xfe1   :  { %v657_v3 = vld [vmem:[#allocation3 + $0x30] sm:$0xff] }
 0xfe2   :  { %782 = vmatmul.msk.f32.gmra.mxu3 %vm166_vm1, %v657_v3 }
0x1065   :  { %v725_v5 = vpop.f32.mrf.mxu3 }
0x1066   :  { %v726_v6 = vadd.f32 %v725_v5, %v668_v4 }
0x1068   :  { %734 = vst [vmem:[#allocation10 + $0x30] sm:$0xff] %v726_v6 }
0x1069   :  { %747 = dma.vmem_to_hbm [thread:$0]  %s740_s30, 896, %s742_s11, [#allocation6], %s945_s13, %s945_s13, %s946_s14  }
0x106a   :  { %942 = dma.done.wait [#allocation6], 896  }
0x106b   :  { %943 = vsyncadd [#allocation6], 4294966400 }
0x106c   :  { %752 = vsyncpa [#allocation5], 1 }
0x106d   :  { %753 = vsyncpa [#allocation8], 1 }
0x106e   :  { %754 = vsyncpa [#allocation6], 1 }

</bundles_post_ra>
